<compile_context>
chip_gen: v6e
topology: v6e:2x2x1
jax: 0.10.0
libtpu: 0.0.40
codegen_flags: <defaults>
</compile_context>

<pallas_src>
import jax
import jax.numpy as jnp
from jax.experimental import pallas as pl
from jax.experimental.pallas import tpu as pltpu

_LANE = 128
_SUBLANE = 8


def _cdiv(a, b):
    return (a + b - 1) // b


def _round_up(a, b):
    return _cdiv(a, b) * b


def _actor_kernel(obs_ref, w1_ref, b1_ref, w2_ref, b2_ref, out_ref):
    # TODO(synk): obs_rms / obs_processor are None in BaseAgent.__init__, so the
    #   normalization branches of forward() are identity and are not emitted.
    # Matmul inputs use the weight dtype (f32 default, optionally bf16 for the
    # v6e/v7x MXU); accumulation, bias add and tanh stay float32 (matches the
    # module's float32 cast and keeps elementwise math off bf16 for v5e).
    x = obs_ref[...].astype(w1_ref.dtype)
    h = jnp.dot(x, w1_ref[...], preferred_element_type=jnp.float32) + b1_ref[...]
    h = jnp.tanh(h)
    y = jnp.dot(h.astype(w2_ref.dtype), w2_ref[...],
                preferred_element_type=jnp.float32) + b2_ref[...]
    out_ref[...] = jnp.tanh(y)


def base_agent_forward(obs, w1, b1, w2, b2, *, bm=256, matmul_dtype=None):
    """BaseAgent.forward with a synthetic 2-layer tanh MLP actor.

    obs: (B, obs_dim) any float dtype. Returns (B, act_dim) float32 actions.
    matmul_dtype: dtype fed to the MXU (None -> float32; jnp.bfloat16 doubles
      MXU rate and halves operand DMA on v6e/v7x; accumulation stays f32).
    """
    B, obs_dim = obs.shape
    k_in, hidden = w1.shape
    h_in, act_dim = w2.shape
    assert k_in == obs_dim and h_in == hidden

    w_dtype = jnp.float32 if matmul_dtype is None else matmul_dtype

    # ---- pick the batch tile --------------------------------------------
    bm_cap = _round_up(max(B, _SUBLANE), _SUBLANE)
    bm_eff = max(_SUBLANE, min(_round_up(bm, _SUBLANE), bm_cap))
    # Prefer >= 2 grid steps so "parallel" can shard across v7x's 2 TensorCores.
    if _cdiv(B, bm_eff) < 2 and B > _SUBLANE:
        bm_eff = max(_SUBLANE, _round_up(_cdiv(B, 2), _SUBLANE))
    Bp = _round_up(B, bm_eff)

    # ---- lane-dense / MXU-friendly padding (exact: zeros contribute 0) ---
    K = _round_up(obs_dim, _LANE)
    H = _round_up(hidden, _LANE)
    N = _round_up(act_dim, _LANE)

    obs_p = jnp.zeros((Bp, K), w_dtype).at[:B, :obs_dim].set(obs.astype(w_dtype))
    w1_p = jnp.zeros((K, H), w_dtype).at[:obs_dim, :hidden].set(w1.astype(w_dtype))
    w2_p = jnp.zeros((H, N), w_dtype).at[:hidden, :act_dim].set(w2.astype(w_dtype))
    b1_p = jnp.zeros((1, H), jnp.float32).at[:, :hidden].set(
        jnp.reshape(b1, (1, hidden)).astype(jnp.float32))
    b2_p = jnp.zeros((1, N), jnp.float32).at[:, :act_dim].set(
        jnp.reshape(b2, (1, act_dim)).astype(jnp.float32))

    grid = (Bp // bm_eff,)
    out_p = pl.pallas_call(
        _actor_kernel,
        out_shape=jax.ShapeDtypeStruct((Bp, N), jnp.float32),
        grid_spec=pltpu.PrefetchScalarGridSpec(
            num_scalar_prefetch=0,
            grid=grid,
            in_specs=[
                pl.BlockSpec((bm_eff, K), lambda i: (i, 0)),   # obs tile
                # Constant-index weights/biases are DMA'd once and stay VMEM
                # resident across grid steps.  TODO(synk): for scaled-up actors
                # on v7x (64 MiB VMEM) add pipeline_mode=pl.Buffered(1) here to
                # single-buffer the resident weights.
                pl.BlockSpec((K, H), lambda i: (0, 0)),        # W1
                pl.BlockSpec((1, H), lambda i: (0, 0)),        # b1
                pl.BlockSpec((H, N), lambda i: (0, 0)),        # W2
                pl.BlockSpec((1, N), lambda i: (0, 0)),        # b2
            ],
            out_specs=pl.BlockSpec((bm_eff, N), lambda i: (i, 0)),
        ),
        compiler_params=pltpu.CompilerParams(
            dimension_semantics=("parallel",)
        ),
    )(obs_p, w1_p, b1_p, w2_p, b2_p)

    return out_p[:B, :act_dim]


def _init_actor_params(key, obs_dim, hidden, act_dim):
    k1, k2, k3, k4 = jax.random.split(key, 4)
    s1 = 1.0 / jnp.sqrt(obs_dim)
    s2 = 1.0 / jnp.sqrt(hidden)
    w1 = jax.random.uniform(k1, (obs_dim, hidden), jnp.float32, -s1, s1)
    b1 = jax.random.uniform(k2, (1, hidden), jnp.float32, -s1, s1)
    w2 = jax.random.uniform(k3, (hidden, act_dim), jnp.float32, -s2, s2)
    b2 = jax.random.uniform(k4, (1, act_dim), jnp.float32, -s2, s2)
    return w1, b1, w2, b2


if __name__ == "__main__":
    key = jax.random.PRNGKey(0)
    k_obs, k_par = jax.random.split(key)

    B, obs_dim, hidden, act_dim = 256, 32, 64, 8
    obs = jax.random.normal(k_obs, (B, obs_dim), dtype=jnp.float32)
    w1, b1, w2, b2 = _init_actor_params(k_par, obs_dim, hidden, act_dim)

    # plain-JAX reference of BaseAgent.forward with the synthetic actor
    ref = jnp.tanh(jnp.tanh(obs @ w1 + b1) @ w2 + b2)

    # 1) full batch, f32 matmuls (exact)
    out = jax.block_until_ready(base_agent_forward(obs, w1, b1, w2, b2))
    assert out.shape == (B, act_dim) and out.dtype == jnp.float32
    assert jnp.allclose(out, ref, atol=1e-5, rtol=1e-5)

    # 2) ragged batch (wrapper pads to the batch tile and slices back)
    out_r = jax.block_until_ready(base_agent_forward(obs[:50], w1, b1, w2, b2))
    assert out_r.shape == (50, act_dim)
    assert jnp.allclose(out_r, ref[:50], atol=1e-5, rtol=1e-5)

    # 3) bf16 matmul inputs (v6e/v7x MXU fast path), f32 accumulation/activations
    out_bf = jax.block_until_ready(
        base_agent_forward(obs, w1, b1, w2, b2, matmul_dtype=jnp.bfloat16))
    assert jnp.allclose(out_bf, ref, atol=1e-1, rtol=1e-1)

    print("KERNEL_OK")
</pallas_src>

<mosaic_0001>
module attributes {stable_mosaic.version = 11 : i64} {
  func.func @_actor_kernel(%arg0: i32, %arg1: memref<128x128xf32, #tpu.memory_space<vmem>>, %arg2: memref<128x128xf32, #tpu.memory_space<vmem>>, %arg3: memref<1x128xf32, #tpu.memory_space<vmem>>, %arg4: memref<128x128xf32, #tpu.memory_space<vmem>>, %arg5: memref<1x128xf32, #tpu.memory_space<vmem>>, %arg6: memref<128x128xf32, #tpu.memory_space<vmem>>) attributes {dimension_semantics = [#tpu.dimension_semantics<parallel>], iteration_bounds = array<i64: 2>, scalar_prefetch = 0 : i64, scratch_operands = 0 : i64, tpu.core_type = #tpu.core_type<tc>, window_params = [{transform_indices = @transform_0, window_bounds = array<i64: 128, 128>}, {pipeline_mode = #tpu.pipeline_mode<synchronous>, transform_indices = @transform_1, window_bounds = array<i64: 128, 128>}, {pipeline_mode = #tpu.pipeline_mode<synchronous>, transform_indices = @transform_2, window_bounds = array<i64: 1, 128>}, {pipeline_mode = #tpu.pipeline_mode<synchronous>, transform_indices = @transform_3, window_bounds = array<i64: 128, 128>}, {pipeline_mode = #tpu.pipeline_mode<synchronous>, transform_indices = @transform_4, window_bounds = array<i64: 1, 128>}, {transform_indices = @transform_5, window_bounds = array<i64: 128, 128>}]} {
    %c0 = arith.constant 0 : index
    %c0_0 = arith.constant 0 : index
    %0 = vector.load %arg1[%c0, %c0_0] : memref<128x128xf32, #tpu.memory_space<vmem>>, vector<128x128xf32>
    %c0_1 = arith.constant 0 : index
    %c0_2 = arith.constant 0 : index
    %1 = vector.load %arg2[%c0_1, %c0_2] : memref<128x128xf32, #tpu.memory_space<vmem>>, vector<128x128xf32>
    %cst = arith.constant dense<0.000000e+00> : vector<128x128xf32>
    %2 = tpu.matmul %0, %1, %cst {dimension_numbers = #tpu.dot_dimension_numbers<[1], [0], [0], [1], [0, 0, 1, 1], [], []>} : vector<128x128xf32>, vector<128x128xf32>, vector<128x128xf32> -> vector<128x128xf32>
    %c0_3 = arith.constant 0 : index
    %c0_4 = arith.constant 0 : index
    %3 = vector.load %arg3[%c0_3, %c0_4] : memref<1x128xf32, #tpu.memory_space<vmem>>, vector<1x128xf32>
    %4 = vector.broadcast %3 : vector<1x128xf32> to vector<128x128xf32>
    %5 = arith.addf %2, %4 : vector<128x128xf32>
    %6 = math.tanh %5 : vector<128x128xf32>
    %c0_5 = arith.constant 0 : index
    %c0_6 = arith.constant 0 : index
    %7 = vector.load %arg4[%c0_5, %c0_6] : memref<128x128xf32, #tpu.memory_space<vmem>>, vector<128x128xf32>
    %cst_7 = arith.constant dense<0.000000e+00> : vector<128x128xf32>
    %8 = tpu.matmul %6, %7, %cst_7 {dimension_numbers = #tpu.dot_dimension_numbers<[1], [0], [0], [1], [0, 0, 1, 1], [], []>} : vector<128x128xf32>, vector<128x128xf32>, vector<128x128xf32> -> vector<128x128xf32>
    %c0_8 = arith.constant 0 : index
    %c0_9 = arith.constant 0 : index
    %9 = vector.load %arg5[%c0_8, %c0_9] : memref<1x128xf32, #tpu.memory_space<vmem>>, vector<1x128xf32>
    %10 = vector.broadcast %9 : vector<1x128xf32> to vector<128x128xf32>
    %11 = arith.addf %8, %10 : vector<128x128xf32>
    %12 = math.tanh %11 : vector<128x128xf32>
    %c0_10 = arith.constant 0 : index
    %c0_11 = arith.constant 0 : index
    %13 = vector.load %arg6[%c0_10, %c0_11] : memref<128x128xf32, #tpu.memory_space<vmem>>, vector<128x128xf32>
    tpu.vector_store %arg6[%c0_10, %c0_11], %12 {strides = array<i32>} : memref<128x128xf32, #tpu.memory_space<vmem>>, vector<128x128xf32>,
    return
  }
  func.func @transform_0(%arg0: i32) -> (i32, i32) {
    %c0_i32 = arith.constant 0 : i32
    %c0_i32_0 = arith.constant 0 : i32
    return %arg0, %c0_i32 : i32, i32
  }
  func.func @transform_1(%arg0: i32) -> (i32, i32) {
    %c0_i32 = arith.constant 0 : i32
    %c0_i32_0 = arith.constant 0 : i32
    %c0_i32_1 = arith.constant 0 : i32
    return %c0_i32, %c0_i32_0 : i32, i32
  }
  func.func @transform_2(%arg0: i32) -> (i32, i32) {
    %c0_i32 = arith.constant 0 : i32
    %c0_i32_0 = arith.constant 0 : i32
    %c0_i32_1 = arith.constant 0 : i32
    return %c0_i32, %c0_i32_0 : i32, i32
  }
  func.func @transform_3(%arg0: i32) -> (i32, i32) {
    %c0_i32 = arith.constant 0 : i32
    %c0_i32_0 = arith.constant 0 : i32
    %c0_i32_1 = arith.constant 0 : i32
    return %c0_i32, %c0_i32_0 : i32, i32
  }
  func.func @transform_4(%arg0: i32) -> (i32, i32) {
    %c0_i32 = arith.constant 0 : i32
    %c0_i32_0 = arith.constant 0 : i32
    %c0_i32_1 = arith.constant 0 : i32
    return %c0_i32, %c0_i32_0 : i32, i32
  }
  func.func @transform_5(%arg0: i32) -> (i32, i32) {
    %c0_i32 = arith.constant 0 : i32
    %c0_i32_0 = arith.constant 0 : i32
    return %arg0, %c0_i32 : i32, i32
  }
}

</mosaic_0001>

<bundles_post_ra>
// kernel: tpu_custom_call.1
= control target key start
LH: loop header
LB: loop body
LE: loop exit
PB: predicated region body
PF: predicated region fallthrough
CT: control target
= control target key end

     0   :  { %10 = vsyncpa [#allocation3], 0  ;;  %s1563_s0 = inlined_call_operand.hbm [shape: f32[256,128], index: 0, kind: input, shape index: {}]   ;;  %s1564_s1 = inlined_call_operand.hbm [shape: f32[128,128], index: 1, kind: input, shape index: {}]   ;;  %s1565_s2 = inlined_call_operand.vmem [shape: f32[1,128], index: 2, kind: input, shape index: {}]   ;;  %s1566_s3 = inlined_call_operand.hbm [shape: f32[128,128], index: 3, kind: input, shape index: {}]   ;;  %s1567_s4 = inlined_call_operand.vmem [shape: f32[1,128], index: 4, kind: input, shape index: {}]   ;;  %s1568_s5 = inlined_call_operand.hbm [shape: f32[256,128], index: 5, kind: output, shape index: {}]  }
   0x1   :  { %12 = vsyncpa [#allocation3 + $0x1], 0 }
   0x2   :  { %13 = vsyncpa [#allocation6], 0 }
   0x3   :  { %14 = vsyncpa [#allocation4], 0 }
   0x4   :  { %16 = vsyncpa [#allocation4 + $0x1], 0  ;;  %s1301_s18 = smov 0   ;;  %s1303_s19 = smov 0  }
   0x5   :  { %s1305_s20 = smov 0   ;;  %s1307_s21 = smov 0  }
   0x6 LB: > { %s1322_s22 = sadd.s32 4294967295, %s1261_s21   ;;  %s780_s23 = sadd.s32 4294967294, %s1261_s21   ;;  %s1261_s21 = sphi %s1307_s21, %s1591_s21   ;;  %s1257_s20 = sphi %s1305_s20, %s1590_s20   ;;  %s1253_s19 = sphi %s1303_s19, %s1589_s19   ;;  %s1249_s18 = sphi %s1301_s18, %s1588_s18  }
   0x7   : > { %p42_p0 = scmp.ne.s32.totalorder %s1253_s19, %s1249_s18  ;;  %p1569_p1 = scmp.eq.s32.totalorder %s1322_s22, 0 }
   0x8   : > { %p150_p2 = scmp.eq.s32.totalorder %s1322_s22, 1  ;;  %p156_p3 = scmp.eq.s32.totalorder %s780_s23, 1 }
   0x9   : > { %p1331_p4 = por %p1569_p1, %p42_p0  ;;  %p781_p5 = scmp.ge.s32.totalorder %s1261_s21, 1 }
   0xa   : > { %p1336_p6 = por %p156_p3, %p42_p0  ;;  %p163_p7 = scmp.lt.s32.totalorder %s1261_s21, 3 }
   0xb   : > { %s1574_s24 = scalar_select %p1331_p4, 1, 0 }
   0xc   : > { %s1575_s25 = scalar_select %p1336_p6, 1, 0 }
   0xd   : > { %p1341_p8 = pnand %p781_p5, %p163_p7  ;;  %s1263_s27 = smov [#allocation5]  }
   0xe   : > { %s175_s28 = sshll.u32 %s1263_s27, 4  ;;  %s1264_s30 = smov [#allocation7]   ;;  %s176_s28 = int_to_ptr.vmem [resolvable:$true] %s175_s28 }
   0xf   : > { %s1576_s26 = scalar_select %p1341_p8, 1, 0 }
  0x10   : > { %p990_p9 = pneg %p1341_p8  ;;  %s191_s6 = sshll.u32 %s1264_s30, 4  ;;  %s192_s6 = int_to_ptr.vmem [resolvable:$true] %s191_s6 }
  0x11   : > { %s1124_s7 = scalar_lea.vmem %s176_s28, 2048  ;;  %p1132_p5 = scmp.lt.s32.totalorder %s176_s28, %s176_s28 }
  0x12   : > { %p1350_p11 = pnand %p990_p9, %p1569_p1  ;;  %p1125_p13 = scmp.ne.s32.totalorder %s176_s28, %s1124_s7 }
  0x13   : > { %p1133_p7 = scmp.lt.s32.totalorder %s1124_s7, %s1124_s7 }
  0x14   : > { %p1115_p12 = pneg %p1350_p11 }
  0x15   : > { %p1134_p10 = por %p1133_p7, %p1132_p5 }
  0x16   : > { %p1127_p0 = pnand %p1125_p13, %p1115_p12 }
  0x18   : > { %p1128_p3 = pneg %p1127_p0 }
  0x1a   : > { %p1135_p9 = pnand %p1134_p10, %p1128_p3 }
  0x1c   : > { %1138 = shalt.err (!%p1135_p9)
}
  0x1d   : > { %s1570_s8 = smov 128   ;;  %s1266_s9 = smov 8  }
  0x1e   : > { %993 = dma.hbm_to_vmem [thread:$0]  (!%p1350_p11), %s1564_s1, 2048, %s176_s28, [#allocation6], %s1570_s8, %s1570_s8, %s1266_s9  }
  0x1f   : > { %s1150_s12 = scalar_lea.vmem %s192_s6, 2048  ;;  %p1158_p10 = scmp.lt.s32.totalorder %s192_s6, %s192_s6 }
  0x20   : > { %p1151_p13 = scmp.ne.s32.totalorder %s192_s6, %s1150_s12  ;;  %p1159_p3 = scmp.lt.s32.totalorder %s1150_s12, %s1150_s12 }
  0x22   : > { %p1153_p0 = pnand %p1151_p13, %p1115_p12  ;;  %p1160_p7 = por %p1159_p3, %p1158_p10 }
  0x24   : > { %p1154_p5 = pneg %p1153_p0 }
  0x26   : > { %p1161_p9 = pnand %p1160_p7, %p1154_p5 }
  0x28   : > { %1164 = shalt.err (!%p1161_p9)
}
  0x29   : > { %996 = dma.hbm_to_vmem [thread:$0]  (!%p1350_p11), %s1566_s3, 2048, %s192_s6, [#allocation6], %s1570_s8, %s1570_s8, %s1266_s9  }
  0x2a   : > { %s1379_s15 = sadd.s32 1, %s1261_s21   ;;  %s29_s16 = sadd.s32 1, %s1257_s20 }
  0x2b   : > { %s26_s17 = ssub.s32 %s1261_s21, %s1379_s15  ;;  %p36_p12 = scmp.ne.s32.totalorder %s1257_s20, %s1253_s19 }
  0x2c   : > { %p27_p13 = scmp.eq.s32.totalorder %s26_s17, 0  ;;  %p37_p0 = scmp.eq.s32.totalorder %s1261_s21, 0 }
  0x2d   : > { %p1389_p5 = por %p150_p2, %p36_p12  ;;  %p1007_p10 = scmp.lt.s32.totalorder %s1261_s21, 2 }
  0x2e   : > { %s1395_s27 = scalar_select %p27_p13, %s1257_s20, %s29_s16  }
  0x2f   : > { %s1578_s23 = scalar_select %p1389_p5, 1, 0 }
  0x30   : > { %p38_p3 = por %p37_p0, %p36_p12  ;;  %s208_s28 = sand.u32 1, %s1257_s20  }
  0x31   : > { %s785_s29 = sshll.u32 %s208_s28, 7  ;;  %s800_s30 = sshll.u32 %s1261_s21, 11 }
  0x32   : > { %s1402_s10 = scalar_lea.hbm %s1563_s0, %s800_s30  ;;  %s212_s11 = scalar_lea.vmem [#allocation2], %s785_s29 }
  0x33   : > { %s219_s12 = sshll.u32 %s212_s11, 4  ;;  %p1406_p2 = pnand %p1007_p10, %p38_p3  ;;  %s1404_s12 = int_to_ptr.vmem [resolvable:$true] %s219_s12 }
  0x34   : > { %s1410_s14 = scalar_lea.sflag [#allocation3], %s208_s28  ;;  %s1165_s16 = scalar_lea.hbm %s1402_s10, 2048 }
  0x35   : > { %p1166_p11 = scmp.ne.s32.totalorder %s1402_s10, %s1165_s16  ;;  %p1167_p7 = pneg %p1406_p2 }
  0x36   : > { %s1170_s29 = scalar_lea.hbm %s1563_s0, 4096  ;;  %p1171_p13 = scmp.lt.s32.totalorder %s1402_s10, %s1563_s0 }
  0x37   : > { %p1168_p9 = pnand %p1167_p7, %p1166_p11  ;;  %p1172_p0 = scmp.lt.s32.totalorder %s1170_s29, %s1165_s16 }
  0x39   : > { %p1169_p12 = pneg %p1168_p9  ;;  %p1173_p10 = por %p1172_p0, %p1171_p13 }
  0x3b   : > { %p1174_p3 = pnand %p1173_p10, %p1169_p12 }
  0x3d   : > { %1177 = shalt.err (!%p1174_p3)
}
  0x3e   : > { %s1178_s28 = scalar_lea.vmem %s1404_s12, 2048  ;;  %s1267_s11 = smov [#allocation2]  }
  0x3f   : > { %p1179_p1 = scmp.ne.s32.totalorder %s1404_s12, %s1178_s28  ;;  %s1183_s8 = sshll.u32 %s1267_s11, 4  ;;  %s1184_s8 = int_to_ptr.vmem [resolvable:$false] %s1183_s8 }
  0x40   : > { %s1185_s17 = scalar_lea.vmem %s1184_s8, 4096  ;;  %p1186_p9 = scmp.lt.s32.totalorder %s1404_s12, %s1184_s8 }
  0x41   : > { %p1181_p6 = pnand %p1179_p1, %p1167_p7  ;;  %p1187_p5 = scmp.lt.s32.totalorder %s1185_s17, %s1178_s28 }
  0x43   : > { %p1182_p11 = pneg %p1181_p6  ;;  %p1188_p4 = por %p1187_p5, %p1186_p9 }
  0x45   : > { %p1189_p8 = pnand %p1188_p4, %p1182_p11 }
  0x47   : > { %1192 = shalt.err (!%p1189_p8)
}
  0x48   : > { %s1580_s16 = smov 128   ;;  %p1581_p1 = scmp.ne.s32.totalorder %s1576_s26, 0 }
  0x49   : > { %1000 = dma.hbm_to_vmem [thread:$0]  (!%p1406_p2), %s1402_s10, 2048, %s1404_s12, %s1410_s14, %s1580_s16, %s1580_s16, %s1266_s9  }
  0x4a   : > { %231 = sbr.rel (%p1581_p1) target bundleno = 581 (0x245), region = 40  ;;  %s1437_s30 = sand.u32 (!%p1581_p1), 1, %s1253_s19  }
  0x4b   : > { %s789_s8 = sshll.u32 (!%p1581_p1), %s1437_s30, 7  ;;  %s234_s29 = scalar_lea.sflag (!%p1581_p1), [#allocation3], %s1437_s30 }
  0x4c   : > { %s1443_s13 = scalar_lea.vmem (!%p1581_p1), [#allocation2], %s789_s8  ;;  %p1582_p4 = scmp.ne.s32.totalorder (!%p1581_p1), %s1574_s24, 0 }
  0x4f   : > { %1236 = dma.done.wait (%p1582_p4), %s234_s29, 2048  }
  0x50   : > { %1238 = vsyncadd (%p1582_p4), %s234_s29, 4294965248  ;;  %p1583_p6 = scmp.eq.s32.totalorder %s1322_s22, 0 }
  0x52   : > { %1240 = dma.done.wait (%p1583_p6), [#allocation6], 4096   ;;  %p1584_p8 = pmov %p1583_p6 }
  0x53   : > { %v305_v0 = vld [vmem:[#allocation5 + $0x78] sm:$0xff]  ;;  %v304_v1 = vld [vmem:[#allocation5 + $0x70] sm:$0xff]  ;;  %v303_v2 = vld [vmem:[#allocation5 + $0x68] sm:$0xff]  ;;  %s1487_s12 = scalar_lea.vmem [#allocation8], %s789_s8  ;;  %s801_s14 = sshll.u32 %s1322_s22, 11 }
  0x54   : > { %1242 = vsyncadd (%p1584_p8), [#allocation6], 4294963200  ;;  %866 = vmatprep.subr.mxu0 %v305_v0  ;;  %v302_v3 = vld [vmem:[#allocation5 + $0x60] sm:$0xff]  ;;  %v301_v5 = vld [vmem:[#allocation5 + $0x58] sm:$0xff]  ;;  %s688_s6 = sshll.u32 %s1487_s12, 4  ;;  %s1516_s11 = scalar_lea.hbm %s1568_s5, %s801_s14  ;;  %s1518_s6 = int_to_ptr.vmem [resolvable:$true] %s688_s6 }
  0x55   : > { %867 = vmatpush3.msra.mxu0 %v305_v0  ;;  %v274_v4 = vld [vmem:[%s1443_s13] sm:$0xff]  ;;  %v300_v6 = vld [vmem:[#allocation5 + $0x50] sm:$0xff]  ;;  %v299_v7 = vld [vmem:[#allocation5 + $0x48] sm:$0xff]  ;;  %s675_s17 = scalar_lea.sflag [#allocation4], %s1437_s30  ;;  %s1193_s16 = scalar_lea.vmem %s1518_s6, 2048 }
  0x56   : > { %868 = vmatprep.subr.mxu0 %v304_v1  ;;  %898 = vmatprep.mubr.f32.mxu0 %v274_v4  ;;  %v489_v8 = vld [vmem:[#allocation7 + $0x78] sm:$0xff]  ;;  %v488_v9 = vld [vmem:[#allocation7 + $0x70] sm:$0xff]  ;;  %v298_v10 = vld [vmem:[#allocation5 + $0x40] sm:$0xff]  ;;  %p1194_p5 = scmp.ne.s32.totalorder %s1518_s6, %s1193_s16  ;;  %p1585_p2 = scmp.ne.s32.totalorder %s1578_s23, 0 }
  0x57   : > { %869 = vmatpush3.msra.mxu0 %v304_v1  ;;  %922 = vmatprep.subr.mxu1 %v489_v8  ;;  %v487_v11 = vld [vmem:[#allocation7 + $0x68] sm:$0xff]  ;;  %v297_v12 = vld [vmem:[#allocation5 + $0x38] sm:$0xff]  ;;  %v486_v13 = vld [vmem:[#allocation7 + $0x60] sm:$0xff]  ;;  %s1268_s22 = smov [#allocation8]  }
  0x58   : > { %870 = vmatprep.subr.mxu0 %v303_v2  ;;  %923 = vmatpush3.msra.mxu1 %v489_v8  ;;  %v296_v14 = vld [vmem:[#allocation5 + $0x30] sm:$0xff]  ;;  %v485_v15 = vld [vmem:[#allocation7 + $0x58] sm:$0xff]  ;;  %v295_v16 = vld [vmem:[#allocation5 + $0x28] sm:$0xff]  ;;  %p1195_p7 = pnand %p1194_p5, %p1585_p2  ;;  %s1197_s8 = sshll.u32 %s1268_s22, 4  ;;  %s1198_s8 = int_to_ptr.vmem [resolvable:$false] %s1197_s8 }
  0x59   : > { %871 = vmatpush3.msra.mxu0 %v303_v2  ;;  %924 = vmatprep.subr.mxu1 %v488_v9  ;;  %v484_v17 = vld [vmem:[#allocation7 + $0x50] sm:$0xff]  ;;  %v294_v18 = vld [vmem:[#allocation5 + $0x20] sm:$0xff]  ;;  %v293_v19 = vld [vmem:[#allocation5 + $0x18] sm:$0xff]  ;;  %s1199_s29 = scalar_lea.vmem %s1198_s8, 4096  ;;  %p1200_p13 = scmp.lt.s32.totalorder %s1518_s6, %s1198_s8 }
  0x5a   : > { %872 = vmatprep.subr.mxu0 %v302_v3  ;;  %925 = vmatpush3.msra.mxu1 %v488_v9  ;;  %v292_v20 = vld [vmem:[#allocation5 + $0x10] sm:$0xff]  ;;  %v291_v21 = vld [vmem:[#allocation5 + $0x8] sm:$0xff]  ;;  %v290_v22 = vld [vmem:[#allocation5] sm:$0xff]  ;;  %p1196_p12 = pneg %p1195_p7  ;;  %p1201_p0 = scmp.lt.s32.totalorder %s1199_s29, %s1193_s16 }
  0x5b   : > { %873 = vmatpush3.msra.mxu0 %v302_v3  ;;  %926 = vmatprep.subr.mxu1 %v487_v11  ;;  %v275_v23 = vld [vmem:[%s1443_s13 + $0x8] sm:$0xff]  ;;  %v276_v24 = vld [vmem:[%s1443_s13 + $0x10] sm:$0xff]  ;;  %v277_v25 = vld [vmem:[%s1443_s13 + $0x18] sm:$0xff] }
  0x5c   : > { %874 = vmatprep.subr.mxu0 %v301_v5  ;;  %927 = vmatpush3.msra.mxu1 %v487_v11  ;;  %v278_v26 = vld [vmem:[%s1443_s13 + $0x20] sm:$0xff]  ;;  %v279_v27 = vld [vmem:[%s1443_s13 + $0x28] sm:$0xff]  ;;  %v280_v28 = vld [vmem:[%s1443_s13 + $0x30] sm:$0xff]  ;;  %p1202_p10 = por %p1201_p0, %p1200_p13 }
  0x5d   : > { %875 = vmatpush3.msra.mxu0 %v301_v5  ;;  %928 = vmatprep.subr.mxu1 %v486_v13  ;;  %v281_v29 = vld [vmem:[%s1443_s13 + $0x38] sm:$0xff]  ;;  %v282_v30 = vld [vmem:[%s1443_s13 + $0x40] sm:$0xff]  ;;  %v283_v31 = vld [vmem:[%s1443_s13 + $0x48] sm:$0xff] }
  0x5e   : > { %876 = vmatprep.subr.mxu0 %v300_v6  ;;  %929 = vmatpush3.msra.mxu1 %v486_v13  ;;  %v284_v32 = vld [vmem:[%s1443_s13 + $0x50] sm:$0xff]  ;;  %v285_v33 = vld [vmem:[%s1443_s13 + $0x58] sm:$0xff]  ;;  %v286_v34 = vld [vmem:[%s1443_s13 + $0x60] sm:$0xff]  ;;  %p1203_p3 = pnand %p1202_p10, %p1196_p12 }
  0x5f   : > { %877 = vmatpush3.msra.mxu0 %v300_v6  ;;  %930 = vmatprep.subr.mxu1 %v485_v15  ;;  %v287_v35 = vld [vmem:[%s1443_s13 + $0x68] sm:$0xff]  ;;  %v288_v36 = vld [vmem:[%s1443_s13 + $0x70] sm:$0xff]  ;;  %v289_v37 = vld [vmem:[%s1443_s13 + $0x78] sm:$0xff] }
  0x60   : > { %878 = vmatprep.subr.mxu0 %v299_v7  ;;  %931 = vmatpush3.msra.mxu1 %v485_v15  ;;  %v483_v38 = vld [vmem:[#allocation7 + $0x48] sm:$0xff]  ;;  %v482_v39 = vld [vmem:[#allocation7 + $0x40] sm:$0xff]  ;;  %v481_v40 = vld [vmem:[#allocation7 + $0x38] sm:$0xff] }
  0x61   : > { %879 = vmatpush3.msra.mxu0 %v299_v7  ;;  %932 = vmatprep.subr.mxu1 %v484_v17  ;;  %v480_v41 = vld [vmem:[#allocation7 + $0x30] sm:$0xff]  ;;  %v479_v42 = vld [vmem:[#allocation7 + $0x28] sm:$0xff]  ;;  %v478_v43 = vld [vmem:[#allocation7 + $0x20] sm:$0xff] }
  0x62   : > { %880 = vmatprep.subr.mxu0 %v298_v10  ;;  %933 = vmatpush3.msra.mxu1 %v484_v17  ;;  %v477_v44 = vld [vmem:[#allocation7 + $0x18] sm:$0xff]  ;;  %v476_v45 = vld [vmem:[#allocation7 + $0x10] sm:$0xff]  ;;  %v475_v46 = vld [vmem:[#allocation7 + $0x8] sm:$0xff] }
  0x63   : > { %881 = vmatpush3.msra.mxu0 %v298_v10  ;;  %934 = vmatprep.subr.mxu1 %v483_v38  ;;  %v474_v47 = vld [vmem:[#allocation7] sm:$0xff] }
  0x64   : > { %882 = vmatprep.subr.mxu0 %v297_v12  ;;  %935 = vmatpush3.msra.mxu1 %v483_v38  ;;  %v793_v48 = vld [vmem:[%s1565_s2] ss:$0 sm:$0xff] }
  0x65   : > { %883 = vmatpush3.msra.mxu0 %v297_v12  ;;  %936 = vmatprep.subr.mxu1 %v482_v39 }
  0x66   : > { %884 = vmatprep.subr.mxu0 %v296_v14  ;;  %937 = vmatpush3.msra.mxu1 %v482_v39 }
  0x67   : > { %885 = vmatpush3.msra.mxu0 %v296_v14  ;;  %938 = vmatprep.subr.mxu1 %v481_v40 }
  0x68   : > { %886 = vmatprep.subr.mxu0 %v295_v16  ;;  %939 = vmatpush3.msra.mxu1 %v481_v40 }
  0x69   : > { %887 = vmatpush3.msra.mxu0 %v295_v16  ;;  %940 = vmatprep.subr.mxu1 %v480_v41 }
  0x6a   : > { %888 = vmatprep.subr.mxu0 %v294_v18  ;;  %941 = vmatpush3.msra.mxu1 %v480_v41 }
  0x6b   : > { %889 = vmatpush3.msra.mxu0 %v294_v18  ;;  %942 = vmatprep.subr.mxu1 %v479_v42 }
  0x6c   : > { %890 = vmatprep.subr.mxu0 %v293_v19  ;;  %943 = vmatpush3.msra.mxu1 %v479_v42 }
  0x6d   : > { %891 = vmatpush3.msra.mxu0 %v293_v19  ;;  %944 = vmatprep.subr.mxu1 %v478_v43 }
  0x6e   : > { %892 = vmatprep.subr.mxu0 %v292_v20  ;;  %945 = vmatpush3.msra.mxu1 %v478_v43 }
  0x6f   : > { %893 = vmatpush3.msra.mxu0 %v292_v20  ;;  %946 = vmatprep.subr.mxu1 %v477_v44 }
  0x70   : > { %894 = vmatprep.subr.mxu0 %v291_v21  ;;  %947 = vmatpush3.msra.mxu1 %v477_v44 }
  0x71   : > { %895 = vmatpush3.msra.mxu0 %v291_v21  ;;  %948 = vmatprep.subr.mxu1 %v476_v45 }
  0x72   : > { %896 = vmatprep.subr.mxu0 %v290_v22  ;;  %949 = vmatpush3.msra.mxu1 %v476_v45 }
  0x73   : > { %897 = vmatpush3.msra.mxu0 %v290_v22  ;;  %950 = vmatprep.subr.mxu1 %v475_v46 }
  0x74   : > { %899 = vmatmul.mubr.f32.vlgmr.msra.gmra.mxu0 %v275_v23  ;;  %951 = vmatpush3.msra.mxu1 %v475_v46 }
  0x75   : > { %901 = vmatprep.mubr.f32.mxu0 %v276_v24  ;;  %952 = vmatprep.subr.mxu1 %v474_v47 }
  0x76   : > { %953 = vmatpush3.msra.mxu1 %v474_v47 }
  0x78   : > { %902 = vmatmul.mubr.f32.gmra.mxu0 %v277_v25 }
  0x79   : > { %904 = vmatprep.mubr.f32.mxu0 %v278_v26 }
  0x7c   : > { %905 = vmatmul.mubr.f32.gmra.mxu0 %v279_v27 }
  0x7d   : > { %907 = vmatprep.mubr.f32.mxu0 %v280_v28 }
  0x80   : > { %908 = vmatmul.mubr.f32.gmra.mxu0 %v281_v29 }
  0x81   : > { %910 = vmatprep.mubr.f32.mxu0 %v282_v30 }
  0x84   : > { %911 = vmatmul.mubr.f32.gmra.mxu0 %v283_v31 }
  0x85   : > { %913 = vmatprep.mubr.f32.mxu0 %v284_v32 }
  0x88   : > { %914 = vmatmul.mubr.f32.gmra.mxu0 %v285_v33  ;;  %v1475_v33 = vld [vmem:[%s1567_s4] ss:$0 sm:$0xff] }
  0x89   : > { %916 = vmatprep.mubr.f32.mxu0 %v286_v34 }
  0x8c   : > { %917 = vmatmul.mubr.f32.gmra.mxu0 %v287_v35 }
  0x8d   : > { %919 = vmatprep.mubr.f32.mxu0 %v288_v36 }
  0x90   : > { %920 = vmatmul.mubr.f32.gmra.mxu0 %v289_v37 }
 0x134   : > { %v900_v49 = vpop.f32.mrf.mxu0 }
 0x135   : > { %v385_v50 = vadd.f32 %v900_v49, %v793_v48 }
 0x136   : > { %v379_v51 = vpop.f32.mrf.mxu0 }
 0x137   : > { %v380_v52 = vadd.f32 %v793_v48, %v379_v51 }
 0x138   : > { %v903_v53 = vpop.f32.mrf.mxu0 }
 0x139   : > { %1049 = vtanh.f32 %v380_v52  ;;  %v395_v54 = vadd.f32 %v903_v53, %v793_v48 }
 0x13a   : > { %1051 = vtanh.f32 %v385_v50  ;;  %v389_v55 = vpop.f32.mrf.mxu0 }
 0x13b   : > { %v390_v56 = vadd.f32 %v793_v48, %v389_v55 }
 0x13c   : > { %v906_v57 = vpop.f32.mrf.mxu0 }
 0x13d   : > { %1053 = vtanh.f32 %v390_v56  ;;  %v405_v58 = vadd.f32 %v906_v57, %v793_v48 }
 0x13e   : > { %1055 = vtanh.f32 %v395_v54  ;;  %v399_v59 = vpop.f32.mrf.mxu0 }
 0x13f   : > { %v400_v60 = vadd.f32 %v793_v48, %v399_v59 }
 0x140   : > { %v909_v61 = vpop.f32.mrf.mxu0 }
 0x141   : > { %1057 = vtanh.f32 %v400_v60  ;;  %v415_v62 = vadd.f32 %v909_v61, %v793_v48 }
 0x142   : > { %1059 = vtanh.f32 %v405_v58  ;;  %v409_v63 = vpop.f32.mrf.mxu0 }
 0x143   : > { %v410_v0 = vadd.f32 %v793_v48, %v409_v63 }
 0x144   : > { %v912_v1 = vpop.f32.mrf.mxu0 }
 0x145   : > { %1061 = vtanh.f32 %v410_v0  ;;  %v425_v3 = vadd.f32 %v912_v1, %v793_v48 }
 0x146   : > { %v1050_v2 = vpop.eup %1049  ;;  %1063 = vtanh.f32 %v415_v62  ;;  %v419_v4 = vpop.f32.mrf.mxu0 }
 0x147   : > { %v1052_v5 = vpop.eup %1051  ;;  %v420_v6 = vadd.f32 %v793_v48, %v419_v4  ;;  %954 = vmatprep.mubr.f32.mxu1 %v1050_v2 }
 0x148   : > { %v915_v7 = vpop.f32.mrf.mxu0  ;;  %955 = vmatmul.mubr.f32.vlgmr.msra.gmra.mxu1 %v1052_v5 }
 0x149   : > { %1065 = vtanh.f32 %v420_v6  ;;  %v435_v9 = vadd.f32 %v915_v7, %v793_v48 }
 0x14a   : > { %v1054_v8 = vpop.eup %1053  ;;  %1067 = vtanh.f32 %v425_v3  ;;  %v429_v10 = vpop.f32.mrf.mxu0 }
 0x14b   : > { %v1056_v11 = vpop.eup %1055  ;;  %v430_v12 = vadd.f32 %v793_v48, %v429_v10  ;;  %957 = vmatprep.mubr.f32.mxu1 %v1054_v8 }
 0x14c   : > { %v918_v13 = vpop.f32.mrf.mxu0  ;;  %958 = vmatmul.mubr.f32.gmra.mxu1 %v1056_v11 }
 0x14d   : > { %1069 = vtanh.f32 %v430_v12  ;;  %v445_v15 = vadd.f32 %v918_v13, %v793_v48 }
 0x14e   : > { %v1058_v14 = vpop.eup %1057  ;;  %1071 = vtanh.f32 %v435_v9  ;;  %v439_v16 = vpop.f32.mrf.mxu0 }
 0x14f   : > { %v1060_v17 = vpop.eup %1059  ;;  %v440_v18 = vadd.f32 %v793_v48, %v439_v16  ;;  %960 = vmatprep.mubr.f32.mxu1 %v1058_v14 }
 0x150   : > { %v921_v19 = vpop.f32.mrf.mxu0  ;;  %961 = vmatmul.mubr.f32.gmra.mxu1 %v1060_v17 }
 0x151   : > { %1073 = vtanh.f32 %v440_v18  ;;  %v455_v21 = vadd.f32 %v921_v19, %v793_v48 }
 0x152   : > { %v1062_v20 = vpop.eup %1061  ;;  %1075 = vtanh.f32 %v445_v15  ;;  %v449_v22 = vpop.f32.mrf.mxu0 }
 0x153   : > { %v1064_v23 = vpop.eup %1063  ;;  %v450_v24 = vadd.f32 %v793_v48, %v449_v22  ;;  %963 = vmatprep.mubr.f32.mxu1 %v1062_v20 }
 0x154   : > { %964 = vmatmul.mubr.f32.gmra.mxu1 %v1064_v23 }
 0x155   : > { %1077 = vtanh.f32 %v450_v24 }
 0x156   : > { %v1066_v25 = vpop.eup %1065  ;;  %1079 = vtanh.f32 %v455_v21 }
 0x157   : > { %v1068_v26 = vpop.eup %1067  ;;  %966 = vmatprep.mubr.f32.mxu1 %v1066_v25 }
 0x158   : > { %967 = vmatmul.mubr.f32.gmra.mxu1 %v1068_v26 }
 0x15a   : > { %v1070_v27 = vpop.eup %1069 }
 0x15b   : > { %v1072_v28 = vpop.eup %1071  ;;  %969 = vmatprep.mubr.f32.mxu1 %v1070_v27 }
 0x15c   : > { %970 = vmatmul.mubr.f32.gmra.mxu1 %v1072_v28 }
 0x15e   : > { %v1074_v29 = vpop.eup %1073 }
 0x15f   : > { %v1076_v30 = vpop.eup %1075  ;;  %972 = vmatprep.mubr.f32.mxu1 %v1074_v29 }
 0x160   : > { %973 = vmatmul.mubr.f32.gmra.mxu1 %v1076_v30 }
 0x162   : > { %v1078_v31 = vpop.eup %1077 }
 0x163   : > { %v1080_v32 = vpop.eup %1079  ;;  %975 = vmatprep.mubr.f32.mxu1 %v1078_v31 }
 0x164   : > { %976 = vmatmul.mubr.f32.gmra.mxu1 %v1080_v32 }
 0x208   : > { %v956_v34 = vpop.f32.mrf.mxu1 }
 0x209   : > { %v569_v35 = vadd.f32 %v956_v34, %v1475_v33 }
 0x20a   : > { %v563_v36 = vpop.f32.mrf.mxu1 }
 0x20b   : > { %1081 = vtanh.f32 %v569_v35  ;;  %v564_v37 = vadd.f32 %v1475_v33, %v563_v36 }
 0x20c   : > { %v959_v38 = vpop.f32.mrf.mxu1 }
 0x20d   : > { %1083 = vtanh.f32 %v564_v37  ;;  %v579_v39 = vadd.f32 %v959_v38, %v1475_v33 }
 0x20e   : > { %v573_v40 = vpop.f32.mrf.mxu1 }
 0x20f   : > { %1085 = vtanh.f32 %v579_v39  ;;  %v574_v41 = vadd.f32 %v1475_v33, %v573_v40 }
 0x210   : > { %v962_v42 = vpop.f32.mrf.mxu1 }
 0x211   : > { %1087 = vtanh.f32 %v574_v41  ;;  %v589_v43 = vadd.f32 %v962_v42, %v1475_v33 }
 0x212   : > { %v583_v44 = vpop.f32.mrf.mxu1 }
 0x213   : > { %1089 = vtanh.f32 %v589_v43  ;;  %v584_v45 = vadd.f32 %v1475_v33, %v583_v44 }
 0x214   : > { %v965_v46 = vpop.f32.mrf.mxu1 }
 0x215   : > { %1091 = vtanh.f32 %v584_v45  ;;  %v599_v47 = vadd.f32 %v965_v46, %v1475_v33 }
 0x216   : > { %v593_v48 = vpop.f32.mrf.mxu1 }
 0x217   : > { %1093 = vtanh.f32 %v599_v47  ;;  %v594_v49 = vadd.f32 %v1475_v33, %v593_v48 }
 0x218   : > { %v1082_v50 = vpop.eup %1081  ;;  %v968_v51 = vpop.f32.mrf.mxu1 }
 0x219   : > { %659 = vst [vmem:[%s1487_s12 + $0x8] sm:$0xff] %v1082_v50  ;;  %1095 = vtanh.f32 %v594_v49  ;;  %v609_v52 = vadd.f32 %v968_v51, %v1475_v33 }
 0x21a   : > { %v1084_v53 = vpop.eup %1083  ;;  %v603_v54 = vpop.f32.mrf.mxu1 }
 0x21b   : > { %658 = vst [vmem:[%s1487_s12] sm:$0xff] %v1084_v53  ;;  %1097 = vtanh.f32 %v609_v52  ;;  %v604_v55 = vadd.f32 %v1475_v33, %v603_v54 }
 0x21c   : > { %v1086_v56 = vpop.eup %1085  ;;  %v971_v57 = vpop.f32.mrf.mxu1 }
 0x21d   : > { %661 = vst [vmem:[%s1487_s12 + $0x18] sm:$0xff] %v1086_v56  ;;  %1099 = vtanh.f32 %v604_v55  ;;  %v619_v58 = vadd.f32 %v971_v57, %v1475_v33 }
 0x21e   : > { %v1088_v59 = vpop.eup %1087  ;;  %v613_v60 = vpop.f32.mrf.mxu1 }
 0x21f   : > { %660 = vst [vmem:[%s1487_s12 + $0x10] sm:$0xff] %v1088_v59  ;;  %1101 = vtanh.f32 %v619_v58  ;;  %v614_v61 = vadd.f32 %v1475_v33, %v613_v60 }
 0x220   : > { %v1090_v62 = vpop.eup %1089  ;;  %v974_v63 = vpop.f32.mrf.mxu1 }
 0x221   : > { %663 = vst [vmem:[%s1487_s12 + $0x28] sm:$0xff] %v1090_v62  ;;  %1103 = vtanh.f32 %v614_v61  ;;  %v629_v0 = vadd.f32 %v974_v63, %v1475_v33 }
 0x222   : > { %v1092_v1 = vpop.eup %1091  ;;  %v623_v2 = vpop.f32.mrf.mxu1 }
 0x223   : > { %662 = vst [vmem:[%s1487_s12 + $0x20] sm:$0xff] %v1092_v1  ;;  %1105 = vtanh.f32 %v629_v0  ;;  %v624_v3 = vadd.f32 %v1475_v33, %v623_v2 }
 0x224   : > { %v1094_v4 = vpop.eup %1093  ;;  %v977_v5 = vpop.f32.mrf.mxu1 }
 0x225   : > { %665 = vst [vmem:[%s1487_s12 + $0x38] sm:$0xff] %v1094_v4  ;;  %1107 = vtanh.f32 %v624_v3  ;;  %v639_v6 = vadd.f32 %v977_v5, %v1475_v33 }
 0x226   : > { %v1096_v7 = vpop.eup %1095  ;;  %v633_v8 = vpop.f32.mrf.mxu1 }
 0x227   : > { %664 = vst [vmem:[%s1487_s12 + $0x30] sm:$0xff] %v1096_v7  ;;  %1109 = vtanh.f32 %v639_v6  ;;  %v634_v9 = vadd.f32 %v1475_v33, %v633_v8 }
 0x228   : > { %v1098_v10 = vpop.eup %1097 }
 0x229   : > { %667 = vst [vmem:[%s1487_s12 + $0x48] sm:$0xff] %v1098_v10  ;;  %1111 = vtanh.f32 %v634_v9 }
 0x22a   : > { %v1100_v11 = vpop.eup %1099 }
 0x22b   : > { %666 = vst [vmem:[%s1487_s12 + $0x40] sm:$0xff] %v1100_v11 }
 0x22c   : > { %v1102_v12 = vpop.eup %1101 }
 0x22d   : > { %669 = vst [vmem:[%s1487_s12 + $0x58] sm:$0xff] %v1102_v12 }
 0x22e   : > { %v1104_v13 = vpop.eup %1103 }
 0x22f   : > { %668 = vst [vmem:[%s1487_s12 + $0x50] sm:$0xff] %v1104_v13 }
 0x230   : > { %v1106_v14 = vpop.eup %1105 }
 0x231   : > { %671 = vst [vmem:[%s1487_s12 + $0x68] sm:$0xff] %v1106_v14 }
 0x232   : > { %v1108_v15 = vpop.eup %1107 }
 0x233   : > { %670 = vst [vmem:[%s1487_s12 + $0x60] sm:$0xff] %v1108_v15 }
 0x234   : > { %v1110_v16 = vpop.eup %1109 }
 0x235   : > { %673 = vst [vmem:[%s1487_s12 + $0x78] sm:$0xff] %v1110_v16 }
 0x236   : > { %v1112_v17 = vpop.eup %1111 }
 0x237   : > { %672 = vst [vmem:[%s1487_s12 + $0x70] sm:$0xff] %v1112_v17 }
 0x238   : > { %1206 = shalt.err (!%p1203_p3)
}
 0x239   : > { %s1207_s13 = scalar_lea.hbm %s1516_s11, 2048  ;;  %s1211_s9 = scalar_lea.hbm %s1568_s5, 4096 }
 0x23a   : > { %p1208_p11 = scmp.ne.s32.totalorder %s1516_s11, %s1207_s13  ;;  %p1212_p4 = scmp.lt.s32.totalorder %s1516_s11, %s1568_s5 }
 0x23b   : > { %p1213_p6 = scmp.lt.s32.totalorder %s1211_s9, %s1207_s13 }
 0x23c   : > { %p1209_p9 = pnand %p1208_p11, %p1585_p2 }
 0x23d   : > { %p1214_p8 = por %p1213_p6, %p1212_p4 }
 0x23e   : > { %p1210_p1 = pneg %p1209_p9 }
 0x240   : > { %p1215_p5 = pnand %p1214_p8, %p1210_p1 }
 0x242   : > { %1218 = shalt.err (!%p1215_p5)
}
 0x243   : > { %s1269_s14 = smov 128   ;;  %s1270_s7 = smov 8  }
 0x244   : > { %988 = dma.vmem_to_hbm [thread:$0]  (%p1585_p2), %s1518_s6, 2048, %s1516_s11, %s675_s17, %s1269_s14, %s1269_s14, %s1270_s7  }
 0x245 PF: > { %s703_s28 = sand.u32 1, %s1249_s18   ;;  %p1586_p7 = scmp.ne.s32.totalorder %s1575_s25, 0 }
 0x246   : > { %p1587_p12 = scmp.ge.s32.totalorder %s1261_s21, 2  ;;  %s704_s16 = scalar_lea.sflag [#allocation4], %s703_s28 }
 0x248   : > { %p1002_p13 = pnand %p1587_p12, %p1586_p7 }
 0x24a   : > { %p1003_p0 = pneg %p1002_p13 }
 0x24c   : > { %1244 = dma.done.wait (%p1003_p0), %s704_s16, 2048  }
 0x24d   : > { %1246 = vsyncadd (%p1003_p0), %s704_s16, 4294965248  ;;  %p19_p10 = scmp.ge.s32.totalorder %s1379_s15, 4   ;;  %s1588_s18 = smov %s1253_s19 }
 0x24e   : > { %s1589_s19 = smov %s1257_s20  ;;  %s1590_s20 = smov %s1395_s27 }
 0x24f   : > { %s1591_s21 = smov %s1379_s15  ;;  %21 = sbr.rel (!%p19_p10) target bundleno = 6 (0x6), region = 93 }
 0x254   :  { %709 = vsyncpa [#allocation3], 1 }
 0x255   :  { %711 = vsyncpa [#allocation3 + $0x1], 1 }
 0x256   :  { %712 = vsyncpa [#allocation6], 1 }
 0x257   :  { %713 = vsyncpa [#allocation4], 1 }
 0x258   :  { %715 = vsyncpa [#allocation4 + $0x1], 1 }

</bundles_post_ra>
